<compile_context>
chip_gen: v6e
topology: v6e:2x2x1
jax: 0.10.0
libtpu: 0.0.40
codegen_flags: <defaults>
</compile_context>

<pallas_src>
import functools

import jax
import jax.numpy as jnp
from jax.experimental import pallas as pl
from jax.experimental.pallas import tpu as pltpu


_HIGHEST = jax.lax.Precision.HIGHEST   # reference only


def _vmem_capacity_bytes():
    """Physical VMEM per core; conservative fallback if query unavailable."""
    try:
        return int(pltpu.get_tpu_info().vmem_capacity_bytes)
    except Exception:
        return 64 * 1024 * 1024        # v7x per-TC VMEM (smallest of the fleet)


def _pick_seq_tile(s):
    """Largest friendly sequence tile that divides S (falls back to full S)."""
    for t in (512, 256, 128):
        if s % t == 0:
            return t
    return s


def _pick_q_tile(s, d, budget_bytes, attn_bytes, io_bytes):
    """VMEM-budget-aware query tile for the attention stage."""
    kv_resident = 2 * 2 * s * d * io_bytes           # double-buffered K and V blocks
    for t in (1024, 512, 256, 128):
        if s % t:
            continue
        need = (kv_resident
                + 2 * t * s * attn_bytes              # double-buffered attn out block
                + t * s * 4                           # in-kernel f32 scores / probs
                + 4 * t * d * io_bytes)               # q in + ctx out blocks
        if need <= budget_bytes:
            return t
    return s


# --------------------------------------------------------------------------
# Stage 1: K/V/Q linear projections, one (batch, seq-tile) block per step.
# --------------------------------------------------------------------------
def _proj_kernel(key_ref, value_ref, query_ref,
                 wk_ref, bk_ref, wv_ref, bv_ref, wq_ref, bq_ref,
                 kp_ref, vp_ref, qp_ref):
    bf16 = jnp.bfloat16
    # TODO(synk): QKV weight fusion into a single (D, 3D) matmul is skipped
    # because key/value/query are distinct inputs (different matmul LHS).
    kp_ref[0] = (jnp.dot(key_ref[0].astype(bf16), wk_ref[...],
                         preferred_element_type=jnp.float32)
                 + bk_ref[...]).astype(kp_ref.dtype)
    vp_ref[0] = (jnp.dot(value_ref[0].astype(bf16), wv_ref[...],
                         preferred_element_type=jnp.float32)
                 + bv_ref[...]).astype(vp_ref.dtype)
    qp_ref[0] = (jnp.dot(query_ref[0].astype(bf16), wq_ref[...],
                         preferred_element_type=jnp.float32)
                 + bq_ref[...]).astype(qp_ref.dtype)


# --------------------------------------------------------------------------
# Stage 2: scaled dot-product attention, one (pseudo-head, q-tile) per step.
# --------------------------------------------------------------------------
def _attention_kernel(q_ref, k_ref, v_ref, attn_ref, ctx_ref, *, scale):
    # Fold the softmax scale into q (q_tile*d multiplies instead of q_tile*S);
    # bf16 * python float stays bf16 (weak promotion), so the MXU gets bf16.
    q = q_ref[0] * scale                 # [q_tile, d] bf16
    k = k_ref[0]                         # [S, d]      bf16 (resident across q tiles)
    v = v_ref[0]                         # [S, d]      bf16
    # Contract the d axis of both operands directly -- no explicit .T.
    s = jax.lax.dot_general(q, k, (((1,), (1,)), ((), ())),
                            preferred_element_type=jnp.float32)
    s = s - jnp.max(s, axis=-1, keepdims=True)
    p = jnp.exp(s)
    p = p * pl.reciprocal(jnp.sum(p, axis=-1, keepdims=True), approx=True)
    # TODO(synk): attention dropout omitted (identity in eval mode).
    attn_ref[0] = p.astype(attn_ref.dtype)
    ctx_ref[0] = jnp.dot(p.astype(jnp.bfloat16), v,
                         preferred_element_type=jnp.float32).astype(ctx_ref.dtype)


# --------------------------------------------------------------------------
# Stage 3: output projection + residual + LayerNorm, one (batch, seq-tile).
# --------------------------------------------------------------------------
def _output_kernel(ctx_ref, res_ref, wo_ref, bo_ref, gamma_ref, beta_ref,
                   out_ref, *, eps):
    o = (jnp.dot(ctx_ref[0], wo_ref[...],
                 preferred_element_type=jnp.float32) + bo_ref[...])
    # TODO(synk): output dropout omitted (identity in eval mode).
    x = res_ref[0] + o                   # residual = original query rows (f32)
    mean = jnp.mean(x, axis=-1, keepdims=True)
    var = jnp.mean(jnp.square(x - mean), axis=-1, keepdims=True)
    normed = (x - mean) * jax.lax.rsqrt(var + eps)
    out_ref[0] = normed * gamma_ref[...] + beta_ref[...]


def multi_heads_self_attention(key, value, query, params, *, num_heads,
                               attn_dtype=jnp.bfloat16):
    """Forward pass. Returns (output [B,S,D] f32, attention [B*H,S,S] attn_dtype)."""
    (wq, bq, wk, bk, wv, bv, wo, bo, gamma, beta) = params
    B, S, D = key.shape
    assert D % num_heads == 0
    d = D // num_heads

    # PyTorch quirk replicated verbatim:
    #   scale = (dim_per_head // num_heads) ** -0.5 if nonzero else 1
    # (silently 1.0 whenever dim_per_head < num_heads).
    dh_over_h = d // num_heads
    scale = float(dh_over_h) ** (-0.5) if dh_over_h != 0 else 1.0

    bf16 = jnp.bfloat16
    f32 = jnp.float32
    # Weights as bf16 MXU operands (biases / LN params stay f32).
    wk_b, wv_b, wq_b, wo_b = (w.astype(bf16) for w in (wk, wv, wq, wo))

    # VMEM-budget-aware limits / tiles (v7x: 64 MiB per TC; v5e/v6e: 128 MiB).
    vmem_cap = _vmem_capacity_bytes()
    vmem_limit = min(3 * vmem_cap // 4, 64 * 1024 * 1024)
    attn_bytes = jnp.dtype(attn_dtype).itemsize
    seq_tile = _pick_seq_tile(S)
    q_tile = _pick_q_tile(S, d, vmem_limit // 2, attn_bytes, io_bytes=2)
    n_seq = S // seq_tile
    n_q = S // q_tile

    def _row_spec(tile):
        return pl.BlockSpec((1, tile, D), lambda b, t: (b, t, 0))

    def _w_spec(shape):
        nd = len(shape)
        return pl.BlockSpec(shape, lambda b, t, _nd=nd: (0,) * _nd)

    par2 = pltpu.CompilerParams(
        dimension_semantics=("parallel", "parallel"),
        vmem_limit_bytes=vmem_limit)

    # ---- stage 1: K/V/Q projections (bf16 outputs) -----------------------
    kp, vp, qp = pl.pallas_call(
        _proj_kernel,
        out_shape=(jax.ShapeDtypeStruct((B, S, D), bf16),
                   jax.ShapeDtypeStruct((B, S, D), bf16),
                   jax.ShapeDtypeStruct((B, S, D), bf16)),
        grid_spec=pltpu.PrefetchScalarGridSpec(
            num_scalar_prefetch=0,
            grid=(B, n_seq),
            in_specs=[_row_spec(seq_tile), _row_spec(seq_tile), _row_spec(seq_tile),
                      _w_spec((D, D)), _w_spec((1, D)),
                      _w_spec((D, D)), _w_spec((1, D)),
                      _w_spec((D, D)), _w_spec((1, D))],
            out_specs=(_row_spec(seq_tile), _row_spec(seq_tile), _row_spec(seq_tile)),
        ),
        compiler_params=par2,
    )(key, value, query, wk_b, bk, wv_b, bv, wq_b, bq)

    # ---- head "split": plain row-major reshape, exactly like torch .view ---
    BH = B * num_heads
    qh = qp.reshape(BH, S, d)
    kh = kp.reshape(BH, S, d)
    vh = vp.reshape(BH, S, d)

    # ---- stage 2: attention per pseudo-head (BH leads for 2-TC sharding) ---
    attn, ctx = pl.pallas_call(
        functools.partial(_attention_kernel, scale=scale),
        out_shape=(jax.ShapeDtypeStruct((BH, S, S), attn_dtype),
                   jax.ShapeDtypeStruct((BH, S, d), bf16)),
        grid_spec=pltpu.PrefetchScalarGridSpec(
            num_scalar_prefetch=0,
            grid=(BH, n_q),
            in_specs=[
                pl.BlockSpec((1, q_tile, d), lambda h, t: (h, t, 0)),
                pl.BlockSpec((1, S, d), lambda h, t: (h, 0, 0)),
                pl.BlockSpec((1, S, d), lambda h, t: (h, 0, 0)),
            ],
            out_specs=(
                pl.BlockSpec((1, q_tile, S), lambda h, t: (h, t, 0)),
                pl.BlockSpec((1, q_tile, d), lambda h, t: (h, t, 0)),
            ),
        ),
        compiler_params=par2,
    )(qh, kh, vh)

    # ---- merge heads back (inverse of the .view above) -------------------
    ctx = ctx.reshape(B, S, D)

    # ---- stage 3: output projection + residual + LayerNorm ---------------
    out = pl.pallas_call(
        functools.partial(_output_kernel, eps=1e-5),
        out_shape=jax.ShapeDtypeStruct((B, S, D), f32),
        grid_spec=pltpu.PrefetchScalarGridSpec(
            num_scalar_prefetch=0,
            grid=(B, n_seq),
            in_specs=[_row_spec(seq_tile), _row_spec(seq_tile),
                      _w_spec((D, D)), _w_spec((1, D)),
                      _w_spec((1, D)), _w_spec((1, D))],
            out_specs=_row_spec(seq_tile),
        ),
        compiler_params=par2,
    )(ctx, query, wo_b, bo, gamma, beta)

    # TODO(synk): torch.squeeze(output) is a no-op for non-degenerate shapes
    # and is therefore not modelled.
    return out, attn


def reference(key, value, query, params, *, num_heads):
    """Pure-JAX f32 forward matching the PyTorch module line by line."""
    (wq, bq, wk, bk, wv, bv, wo, bo, gamma, beta) = params
    B, S, D = key.shape
    d = D // num_heads
    residual = query

    k = jnp.dot(key, wk, precision=_HIGHEST) + bk[0]
    v = jnp.dot(value, wv, precision=_HIGHEST) + bv[0]
    q = jnp.dot(query, wq, precision=_HIGHEST) + bq[0]

    k = k.reshape(B * num_heads, -1, d)
    v = v.reshape(B * num_heads, -1, d)
    q = q.reshape(B * num_heads, -1, d)

    dh_over_h = d // num_heads
    scale = float(dh_over_h) ** (-0.5) if dh_over_h != 0 else 1.0

    att = jnp.einsum('ijk,ilk->ijl', q, k, precision=_HIGHEST) * scale
    att = jax.nn.softmax(att, axis=2)
    ctx = jnp.einsum('ijl,ilk->ijk', att, v, precision=_HIGHEST)
    ctx = ctx.reshape(B, -1, D)

    out = jnp.dot(ctx, wo, precision=_HIGHEST) + bo[0]
    x = residual + out
    mean = jnp.mean(x, axis=-1, keepdims=True)
    var = jnp.mean((x - mean) ** 2, axis=-1, keepdims=True)
    out = (x - mean) / jnp.sqrt(var + 1e-5) * gamma[0] + beta[0]
    return out, att


def init_params(rng, feature_dim):
    """Deterministic parameter init (shapes per nn.Linear / nn.LayerNorm)."""
    D = feature_dim
    keys = jax.random.split(rng, 8)
    s = 1.0 / (D ** 0.5)
    # Stored as [in, out] (torch W^T) so kernels compute x @ W + b.
    wq = jax.random.uniform(keys[0], (D, D), jnp.float32, -s, s)
    bq = jax.random.uniform(keys[1], (1, D), jnp.float32, -s, s)
    wk = jax.random.uniform(keys[2], (D, D), jnp.float32, -s, s)
    bk = jax.random.uniform(keys[3], (1, D), jnp.float32, -s, s)
    wv = jax.random.uniform(keys[4], (D, D), jnp.float32, -s, s)
    bv = jax.random.uniform(keys[5], (1, D), jnp.float32, -s, s)
    wo = jax.random.uniform(keys[6], (D, D), jnp.float32, -s, s)
    bo = jax.random.uniform(keys[7], (1, D), jnp.float32, -s, s)
    gamma = jnp.ones((1, D), jnp.float32)   # LayerNorm weight default
    beta = jnp.zeros((1, D), jnp.float32)   # LayerNorm bias default
    return (wq, bq, wk, bk, wv, bv, wo, bo, gamma, beta)


if __name__ == "__main__":
    B, S, D = 2, 8, 32
    NUM_HEADS = 4

    root = jax.random.PRNGKey(0)
    k_in, k_val, k_qry, k_par = jax.random.split(root, 4)

    key = jax.random.normal(k_in, (B, S, D), jnp.float32)
    value = jax.random.normal(k_val, (B, S, D), jnp.float32)
    query = jax.random.normal(k_qry, (B, S, D), jnp.float32)
    params = init_params(k_par, D)

    out, attn = multi_heads_self_attention(key, value, query, params,
                                           num_heads=NUM_HEADS)
    out = jax.block_until_ready(out)
    attn = jax.block_until_ready(attn)

    out_ref, attn_ref = reference(key, value, query, params,
                                  num_heads=NUM_HEADS)

    assert out.shape == (B, S, D)
    assert attn.shape == (B * NUM_HEADS, S, S)
    # bf16 MXU operands + bf16 inter-stage tensors: tolerance loosened vs. the
    # f32/HIGHEST reference (per the performance-review note).
    out_f32 = out.astype(jnp.float32)
    attn_f32 = attn.astype(jnp.float32)
    assert jnp.allclose(out_f32, out_ref, atol=5e-2, rtol=5e-2), \
        float(jnp.max(jnp.abs(out_f32 - out_ref)))
    assert jnp.allclose(attn_f32, attn_ref, atol=5e-2, rtol=5e-2), \
        float(jnp.max(jnp.abs(attn_f32 - attn_ref)))

    print("KERNEL_OK")
</pallas_src>

<mosaic_0001>
module attributes {stable_mosaic.version = 11 : i64} {
  func.func @_proj_kernel(%arg0: i32, %arg1: i32, %arg2: memref<1x8x32xf32, #tpu.memory_space<vmem>>, %arg3: memref<1x8x32xf32, #tpu.memory_space<vmem>>, %arg4: memref<1x8x32xf32, #tpu.memory_space<vmem>>, %arg5: memref<32x32xbf16, #tpu.memory_space<vmem>>, %arg6: memref<1x32xf32, #tpu.memory_space<vmem>>, %arg7: memref<32x32xbf16, #tpu.memory_space<vmem>>, %arg8: memref<1x32xf32, #tpu.memory_space<vmem>>, %arg9: memref<32x32xbf16, #tpu.memory_space<vmem>>, %arg10: memref<1x32xf32, #tpu.memory_space<vmem>>, %arg11: memref<1x8x32xbf16, #tpu.memory_space<vmem>>, %arg12: memref<1x8x32xbf16, #tpu.memory_space<vmem>>, %arg13: memref<1x8x32xbf16, #tpu.memory_space<vmem>>) attributes {dimension_semantics = [#tpu.dimension_semantics<parallel>, #tpu.dimension_semantics<parallel>], iteration_bounds = array<i64: 2, 1>, scalar_prefetch = 0 : i64, scratch_operands = 0 : i64, tpu.core_type = #tpu.core_type<tc>, window_params = [{transform_indices = @transform_0, window_bounds = array<i64: 1, 8, 32>}, {transform_indices = @transform_1, window_bounds = array<i64: 1, 8, 32>}, {transform_indices = @transform_2, window_bounds = array<i64: 1, 8, 32>}, {pipeline_mode = #tpu.pipeline_mode<synchronous>, transform_indices = @transform_3, window_bounds = array<i64: 32, 32>}, {pipeline_mode = #tpu.pipeline_mode<synchronous>, transform_indices = @transform_4, window_bounds = array<i64: 1, 32>}, {pipeline_mode = #tpu.pipeline_mode<synchronous>, transform_indices = @transform_5, window_bounds = array<i64: 32, 32>}, {pipeline_mode = #tpu.pipeline_mode<synchronous>, transform_indices = @transform_6, window_bounds = array<i64: 1, 32>}, {pipeline_mode = #tpu.pipeline_mode<synchronous>, transform_indices = @transform_7, window_bounds = array<i64: 32, 32>}, {pipeline_mode = #tpu.pipeline_mode<synchronous>, transform_indices = @transform_8, window_bounds = array<i64: 1, 32>}, {transform_indices = @transform_9, window_bounds = array<i64: 1, 8, 32>}, {transform_indices = @transform_10, window_bounds = array<i64: 1, 8, 32>}, {transform_indices = @transform_11, window_bounds = array<i64: 1, 8, 32>}]} {
    %c0 = arith.constant 0 : index
    %c0_0 = arith.constant 0 : index
    %c0_1 = arith.constant 0 : index
    %0 = vector.load %arg2[%c0, %c0_0, %c0_1] : memref<1x8x32xf32, #tpu.memory_space<vmem>>, vector<1x8x32xf32>
    %1 = vector.shape_cast %0 : vector<1x8x32xf32> to vector<8x32xf32>
    %2 = arith.truncf %1 : vector<8x32xf32> to vector<8x32xbf16>
    %c0_2 = arith.constant 0 : index
    %c0_3 = arith.constant 0 : index
    %3 = vector.load %arg5[%c0_2, %c0_3] : memref<32x32xbf16, #tpu.memory_space<vmem>>, vector<32x32xbf16>
    %cst = arith.constant dense<0.000000e+00> : vector<8x32xf32>
    %4 = tpu.matmul %2, %3, %cst {dimension_numbers = #tpu.dot_dimension_numbers<[1], [0], [0], [1], [0, 0, 1, 1], [], []>} : vector<8x32xbf16>, vector<32x32xbf16>, vector<8x32xf32> -> vector<8x32xf32>
    %c0_4 = arith.constant 0 : index
    %c0_5 = arith.constant 0 : index
    %5 = vector.load %arg6[%c0_4, %c0_5] : memref<1x32xf32, #tpu.memory_space<vmem>>, vector<1x32xf32>
    %6 = vector.broadcast %5 : vector<1x32xf32> to vector<8x32xf32>
    %7 = arith.addf %4, %6 : vector<8x32xf32>
    %8 = arith.truncf %7 : vector<8x32xf32> to vector<8x32xbf16>
    %c0_6 = arith.constant 0 : index
    %c0_7 = arith.constant 0 : index
    %c0_8 = arith.constant 0 : index
    %9 = vector.load %arg11[%c0_6, %c0_7, %c0_8] : memref<1x8x32xbf16, #tpu.memory_space<vmem>>, vector<1x8x32xbf16>
    %10 = vector.shape_cast %9 : vector<1x8x32xbf16> to vector<8x32xbf16>
    %11 = vector.shape_cast %8 : vector<8x32xbf16> to vector<1x8x32xbf16>
    tpu.vector_store %arg11[%c0_6, %c0_7, %c0_8], %11 {strides = array<i32>} : memref<1x8x32xbf16, #tpu.memory_space<vmem>>, vector<1x8x32xbf16>,
    %c0_9 = arith.constant 0 : index
    %c0_10 = arith.constant 0 : index
    %c0_11 = arith.constant 0 : index
    %12 = vector.load %arg3[%c0_9, %c0_10, %c0_11] : memref<1x8x32xf32, #tpu.memory_space<vmem>>, vector<1x8x32xf32>
    %13 = vector.shape_cast %12 : vector<1x8x32xf32> to vector<8x32xf32>
    %14 = arith.truncf %13 : vector<8x32xf32> to vector<8x32xbf16>
    %c0_12 = arith.constant 0 : index
    %c0_13 = arith.constant 0 : index
    %15 = vector.load %arg7[%c0_12, %c0_13] : memref<32x32xbf16, #tpu.memory_space<vmem>>, vector<32x32xbf16>
    %cst_14 = arith.constant dense<0.000000e+00> : vector<8x32xf32>
    %16 = tpu.matmul %14, %15, %cst_14 {dimension_numbers = #tpu.dot_dimension_numbers<[1], [0], [0], [1], [0, 0, 1, 1], [], []>} : vector<8x32xbf16>, vector<32x32xbf16>, vector<8x32xf32> -> vector<8x32xf32>
    %c0_15 = arith.constant 0 : index
    %c0_16 = arith.constant 0 : index
    %17 = vector.load %arg8[%c0_15, %c0_16] : memref<1x32xf32, #tpu.memory_space<vmem>>, vector<1x32xf32>
    %18 = vector.broadcast %17 : vector<1x32xf32> to vector<8x32xf32>
    %19 = arith.addf %16, %18 : vector<8x32xf32>
    %20 = arith.truncf %19 : vector<8x32xf32> to vector<8x32xbf16>
    %c0_17 = arith.constant 0 : index
    %c0_18 = arith.constant 0 : index
    %c0_19 = arith.constant 0 : index
    %21 = vector.load %arg12[%c0_17, %c0_18, %c0_19] : memref<1x8x32xbf16, #tpu.memory_space<vmem>>, vector<1x8x32xbf16>
    %22 = vector.shape_cast %21 : vector<1x8x32xbf16> to vector<8x32xbf16>
    %23 = vector.shape_cast %20 : vector<8x32xbf16> to vector<1x8x32xbf16>
    tpu.vector_store %arg12[%c0_17, %c0_18, %c0_19], %23 {strides = array<i32>} : memref<1x8x32xbf16, #tpu.memory_space<vmem>>, vector<1x8x32xbf16>,
    %c0_20 = arith.constant 0 : index
    %c0_21 = arith.constant 0 : index
    %c0_22 = arith.constant 0 : index
    %24 = vector.load %arg4[%c0_20, %c0_21, %c0_22] : memref<1x8x32xf32, #tpu.memory_space<vmem>>, vector<1x8x32xf32>
    %25 = vector.shape_cast %24 : vector<1x8x32xf32> to vector<8x32xf32>
    %26 = arith.truncf %25 : vector<8x32xf32> to vector<8x32xbf16>
    %c0_23 = arith.constant 0 : index
    %c0_24 = arith.constant 0 : index
    %27 = vector.load %arg9[%c0_23, %c0_24] : memref<32x32xbf16, #tpu.memory_space<vmem>>, vector<32x32xbf16>
    %cst_25 = arith.constant dense<0.000000e+00> : vector<8x32xf32>
    %28 = tpu.matmul %26, %27, %cst_25 {dimension_numbers = #tpu.dot_dimension_numbers<[1], [0], [0], [1], [0, 0, 1, 1], [], []>} : vector<8x32xbf16>, vector<32x32xbf16>, vector<8x32xf32> -> vector<8x32xf32>
    %c0_26 = arith.constant 0 : index
    %c0_27 = arith.constant 0 : index
    %29 = vector.load %arg10[%c0_26, %c0_27] : memref<1x32xf32, #tpu.memory_space<vmem>>, vector<1x32xf32>
    %30 = vector.broadcast %29 : vector<1x32xf32> to vector<8x32xf32>
    %31 = arith.addf %28, %30 : vector<8x32xf32>
    %32 = arith.truncf %31 : vector<8x32xf32> to vector<8x32xbf16>
    %c0_28 = arith.constant 0 : index
    %c0_29 = arith.constant 0 : index
    %c0_30 = arith.constant 0 : index
    %33 = vector.load %arg13[%c0_28, %c0_29, %c0_30] : memref<1x8x32xbf16, #tpu.memory_space<vmem>>, vector<1x8x32xbf16>
    %34 = vector.shape_cast %33 : vector<1x8x32xbf16> to vector<8x32xbf16>
    %35 = vector.shape_cast %32 : vector<8x32xbf16> to vector<1x8x32xbf16>
    tpu.vector_store %arg13[%c0_28, %c0_29, %c0_30], %35 {strides = array<i32>} : memref<1x8x32xbf16, #tpu.memory_space<vmem>>, vector<1x8x32xbf16>,
    return
  }
  func.func @transform_0(%arg0: i32, %arg1: i32) -> (i32, i32, i32) {
    %c0_i32 = arith.constant 0 : i32
    %c0_i32_0 = arith.constant 0 : i32
    return %arg0, %arg1, %c0_i32 : i32, i32, i32
  }
  func.func @transform_1(%arg0: i32, %arg1: i32) -> (i32, i32, i32) {
    %c0_i32 = arith.constant 0 : i32
    %c0_i32_0 = arith.constant 0 : i32
    return %arg0, %arg1, %c0_i32 : i32, i32, i32
  }
  func.func @transform_2(%arg0: i32, %arg1: i32) -> (i32, i32, i32) {
    %c0_i32 = arith.constant 0 : i32
    %c0_i32_0 = arith.constant 0 : i32
    return %arg0, %arg1, %c0_i32 : i32, i32, i32
  }
  func.func @transform_3(%arg0: i32, %arg1: i32) -> (i32, i32) {
    %c0_i32 = arith.constant 0 : i32
    %c0_i32_0 = arith.constant 0 : i32
    %c0_i32_1 = arith.constant 0 : i32
    return %c0_i32, %c0_i32_0 : i32, i32
  }
  func.func @transform_4(%arg0: i32, %arg1: i32) -> (i32, i32) {
    %c0_i32 = arith.constant 0 : i32
    %c0_i32_0 = arith.constant 0 : i32
    %c0_i32_1 = arith.constant 0 : i32
    return %c0_i32, %c0_i32_0 : i32, i32
  }
  func.func @transform_5(%arg0: i32, %arg1: i32) -> (i32, i32) {
    %c0_i32 = arith.constant 0 : i32
    %c0_i32_0 = arith.constant 0 : i32
    %c0_i32_1 = arith.constant 0 : i32
    return %c0_i32, %c0_i32_0 : i32, i32
  }
  func.func @transform_6(%arg0: i32, %arg1: i32) -> (i32, i32) {
    %c0_i32 = arith.constant 0 : i32
    %c0_i32_0 = arith.constant 0 : i32
    %c0_i32_1 = arith.constant 0 : i32
    return %c0_i32, %c0_i32_0 : i32, i32
  }
  func.func @transform_7(%arg0: i32, %arg1: i32) -> (i32, i32) {
    %c0_i32 = arith.constant 0 : i32
    %c0_i32_0 = arith.constant 0 : i32
    %c0_i32_1 = arith.constant 0 : i32
    return %c0_i32, %c0_i32_0 : i32, i32
  }
  func.func @transform_8(%arg0: i32, %arg1: i32) -> (i32, i32) {
    %c0_i32 = arith.constant 0 : i32
    %c0_i32_0 = arith.constant 0 : i32
    %c0_i32_1 = arith.constant 0 : i32
    return %c0_i32, %c0_i32_0 : i32, i32
  }
  func.func @transform_9(%arg0: i32, %arg1: i32) -> (i32, i32, i32) {
    %c0_i32 = arith.constant 0 : i32
    %c0_i32_0 = arith.constant 0 : i32
    return %arg0, %arg1, %c0_i32 : i32, i32, i32
  }
  func.func @transform_10(%arg0: i32, %arg1: i32) -> (i32, i32, i32) {
    %c0_i32 = arith.constant 0 : i32
    %c0_i32_0 = arith.constant 0 : i32
    return %arg0, %arg1, %c0_i32 : i32, i32, i32
  }
  func.func @transform_11(%arg0: i32, %arg1: i32) -> (i32, i32, i32) {
    %c0_i32 = arith.constant 0 : i32
    %c0_i32_0 = arith.constant 0 : i32
    return %arg0, %arg1, %c0_i32 : i32, i32, i32
  }
}

</mosaic_0001>

<bundles_post_ra>
// kernel: tpu_custom_call.1
= control target key start
LH: loop header
LB: loop body
LE: loop exit
PB: predicated region body
PF: predicated region fallthrough
CT: control target
= control target key end

     0   :  { %s1966_s0 = inlined_call_operand.hbm [shape: f32[2,8,32], index: 0, kind: input, shape index: {}]   ;;  %s1967_s1 = inlined_call_operand.hbm [shape: f32[2,8,32], index: 1, kind: input, shape index: {}]   ;;  %s1968_s2 = inlined_call_operand.hbm [shape: f32[2,8,32], index: 2, kind: input, shape index: {}]   ;;  %s1969_s3 = inlined_call_operand.hbm [shape: bf16[32,32], index: 3, kind: input, shape index: {}]   ;;  %s1970_s4 = inlined_call_operand.vmem [shape: f32[1,32], index: 4, kind: input, shape index: {}]   ;;  %s1971_s5 = inlined_call_operand.hbm [shape: bf16[32,32], index: 5, kind: input, shape index: {}]   ;;  %s1972_s6 = inlined_call_operand.vmem [shape: f32[1,32], index: 6, kind: input, shape index: {}]   ;;  %s1973_s7 = inlined_call_operand.hbm [shape: bf16[32,32], index: 7, kind: input, shape index: {}]   ;;  %s1974_s8 = inlined_call_operand.vmem [shape: f32[1,32], index: 8, kind: input, shape index: {}]   ;;  %s1975_s9 = inlined_call_operand.hbm [shape: bf16[2,8,32], index: 9, kind: output, shape index: {0}]   ;;  %s1976_s10 = inlined_call_operand.hbm [shape: bf16[2,8,32], index: 10, kind: output, shape index: {1}]   ;;  %s1977_s11 = inlined_call_operand.hbm [shape: bf16[2,8,32], index: 11, kind: output, shape index: {2}]  }
   0x1   :  { %1998 = sst [smem:[#allocation29_spill]] %s1967_s1 }
   0x2   :  { %1999 = sst [smem:[#allocation30_spill]] %s1969_s3 }
   0x3   :  { %2000 = sst [smem:[#allocation31_spill]] %s1971_s5 }
   0x4   :  { %2001 = sst [smem:[#allocation32_spill]] %s1974_s8 }
   0x5   :  { %2002 = sst [smem:[#allocation33_spill]] %s1976_s10 }
   0x6   :  { %2003 = sst [smem:[#allocation34_spill]] %s1977_s11 }
   0x7   :  { %17 = vsyncpa [#allocation3], 0 }
   0x8   :  { %19 = vsyncpa [#allocation3 + $0x1], 0 }
   0x9   :  { %20 = vsyncpa [#allocation6], 0 }
   0xa   :  { %22 = vsyncpa [#allocation6 + $0x1], 0 }
   0xb   :  { %23 = vsyncpa [#allocation9], 0 }
   0xc   :  { %24 = vsyncpa [#allocation12], 0 }
   0xd   :  { %25 = vsyncpa [#allocation4], 0 }
   0xe   :  { %27 = vsyncpa [#allocation4 + $0x1], 0 }
   0xf   :  { %28 = vsyncpa [#allocation15], 0 }
  0x10   :  { %30 = vsyncpa [#allocation15 + $0x1], 0  ;;  %s1629_s17 = smov 0   ;;  %s1631_s18 = smov 0  }
  0x11   :  { %s1633_s19 = smov 0   ;;  %s1635_s20 = smov 0  }
  0x12   :  { %s1637_s21 = smov 0   ;;  %s1639_s22 = smov 0  }
  0x13 LB: > { %2004 = sst [smem:[#allocation23_spill]] %s1534_s17  ;;  %s1660_s23 = sadd.s32 4294967295, %s1554_s22   ;;  %s1554_s22 = sphi %s1639_s22, %s36_s22   ;;  %s1550_s21 = sphi %s1637_s21, %s2047_s21   ;;  %s1546_s20 = sphi %s1635_s20, %s2046_s20   ;;  %s1542_s19 = sphi %s1633_s19, %s2050_s19   ;;  %s1538_s18 = sphi %s1631_s18, %s2049_s18   ;;  %s1534_s17 = sphi %s1629_s17, %s2048_s17  }
  0x14   : > { %2005 = sst [smem:[#allocation24_spill]] %s1550_s21  ;;  %s1978_s24 = sadd.s32 4294967294, %s1554_s22  }
  0x15   : > { %2006 = sst [smem:[#allocation25_spill]] %s1554_s22  ;;  %p70_p0 = scmp.ne.s32.totalorder %s1538_s18, %s1534_s17 }
  0x16   : > { %p1992_p1 = scmp.eq.s32.totalorder %s1660_s23, 0  ;;  %p284_p3 = scmp.eq.s32.totalorder %s1978_s24, 1 }
  0x17   : > { %p1047_p5 = scmp.ge.s32.totalorder %s1554_s22, 1  ;;  %p347_p7 = scmp.lt.s32.totalorder %s1554_s22, 3 }
  0x18   : > { %p1671_p4 = por %p1992_p1, %p70_p0  ;;  %p1676_p6 = por %p284_p3, %p70_p0 }
  0x19   : > { %p1681_p8 = pnand %p1047_p5, %p347_p7  ;;  %s1556_s28 = smov [#allocation8]  }
  0x1a   : > { %s2007_s25 = scalar_select %p1671_p4, 1, 0 }
  0x1b   : > { %s2008_s26 = scalar_select %p1676_p6, 1, 0 }
  0x1c   : > { %s2010_s27 = scalar_select %p1681_p8, 1, 0 }
  0x1d   : > { %2009 = sst [smem:[#allocation26_spill]] %s2008_s26  ;;  %s359_s29 = sshll.u32 %s1556_s28, 4  ;;  %s360_s29 = int_to_ptr.vmem [resolvable:$true] %s359_s29 }
  0x1e   : > { %p1145_p9 = pneg %p1681_p8  ;;  %s48_s12 = sadd.s32 1, %s1550_s21 }
  0x1f   : > { %s1255_s13 = scalar_lea.vmem %s360_s29, 256  ;;  %p1263_p5 = scmp.lt.s32.totalorder %s360_s29, %s360_s29 }
  0x20   : > { %p1690_p11 = pnand %p1145_p9, %p1992_p1  ;;  %p1256_p13 = scmp.ne.s32.totalorder %s360_s29, %s1255_s13 }
  0x21   : > { %p1264_p7 = scmp.lt.s32.totalorder %s1255_s13, %s1255_s13 }
  0x22   : > { %p1993_p12 = pneg %p1690_p11 }
  0x23   : > { %p1265_p2 = por %p1264_p7, %p1263_p5 }
  0x24   : > { %p1258_p0 = pnand %p1256_p13, %p1993_p12 }
  0x26   : > { %p1259_p3 = pneg %p1258_p0 }
  0x28   : > { %p1266_p10 = pnand %p1265_p2, %p1259_p3 }
  0x2a   : > { %1269 = shalt.err (!%p1266_p10)
}
  0x2b   : > { %s1981_s14 = smov 64   ;;  %s1983_s15 = smov 4  }
  0x2c   : > { %s2012_s3 = sld [smem:[#allocation30_spill]]  ;;  %p50_p2 = scmp.ge.s32.totalorder %s48_s12, 2 }
  0x2d   : > { %s57_s13 = sadd.s32 1, %s1542_s19  ;;  %p64_p9 = scmp.ne.s32.totalorder %s1542_s19, %s1538_s18 }
  0x2e   : > { %p65_p10 = scmp.eq.s32.totalorder %s1554_s22, 0  ;;  %s2052_s12 = smov (%p50_p2, %s48_s12), 0 }
  0x2f   : > { %2013 = sst [smem:[#allocation27_spill]] %s2052_s12  ;;  %p2014_p0 = scmp.eq.s32.totalorder %s1660_s23, 1 }
  0x30   : > { %p66_p13 = por %p65_p10, %p64_p9  ;;  %s52_s26 = ssub.s32 %s1550_s21, %s2052_s12 }
  0x31   : > { %p1716_p3 = por %p2014_p0, %p64_p9  ;;  %p1178_p5 = scmp.lt.s32.totalorder %s1554_s22, 2 }
  0x32   : > { %1148 = dma.hbm_to_vmem [thread:$0]  (!%p1690_p11), %s2012_s3, 256, %s360_s29, [#allocation9], %s1981_s14, %s1981_s14, %s1983_s15  }
  0x33   : > { %s2015_s24 = scalar_select %p1716_p3, 1, 0 }
  0x34   : > { %p55_p7 = scmp.eq.s32.totalorder %s52_s26, 0  ;;  %s1987_s17 = sand.u32 1, %s1542_s19  }
  0x35   : > { %s1726_s29 = sshll.u32 %s1987_s17, 3  ;;  %s1729_s16 = sshll.u32 %s1550_s21, 7 }
  0x36   : > { %s1732_s28 = scalar_select %p55_p7, %s1542_s19, %s57_s13  }
  0x37   : > { %p1734_p2 = pnand %p1178_p5, %p66_p13  ;;  %s427_s15 = sand.u32 1, %s1554_s22  }
  0x38   : > { %2016 = sst [smem:[#allocation28_spill]] %s1732_s28  ;;  %s431_s11 = scalar_lea.vmem [#allocation5], %s1726_s29 }
  0x39   : > { %s2018_s1 = sld [smem:[#allocation29_spill]]  ;;  %s439_s17 = sshll.u32 %s431_s11, 4  ;;  %s440_s17 = int_to_ptr.vmem [resolvable:$true] %s439_s17 }
  0x3a   : > { %s1559_s8 = smov [#allocation10]   ;;  %s1744_s10 = scalar_lea.sflag [#allocation6], %s427_s15 }
  0x3b   : > { %s375_s21 = sshll.u32 %s1559_s8, 4  ;;  %p1994_p9 = pneg %p1734_p2  ;;  %s376_s21 = int_to_ptr.vmem [resolvable:$true] %s375_s21 }
  0x3c   : > { %s1283_s13 = scalar_lea.vmem %s440_s17, 128  ;;  %s1560_s28 = smov [#allocation5]  }
  0x3d   : > { %p1284_p10 = scmp.ne.s32.totalorder %s440_s17, %s1283_s13  ;;  %s1288_s22 = sshll.u32 %s1560_s28, 4  ;;  %s1289_s22 = int_to_ptr.vmem [resolvable:$false] %s1288_s22 }
  0x3e   : > { %s1290_s3 = scalar_lea.vmem %s1289_s22, 256  ;;  %p1291_p5 = scmp.lt.s32.totalorder %s440_s17, %s1289_s22 }
  0x3f   : > { %s437_s26 = scalar_lea.hbm %s2018_s1, %s1729_s16  ;;  %p1286_p13 = pnand %p1284_p10, %p1994_p9 }
  0x40   : > { %p1292_p7 = scmp.lt.s32.totalorder %s1290_s3, %s1283_s13 }
  0x41   : > { %p1287_p0 = pneg %p1286_p13 }
  0x42   : > { %p1293_p1 = por %p1292_p7, %p1291_p5 }
  0x44   : > { %p1294_p12 = pnand %p1293_p1, %p1287_p0 }
  0x46   : > { %1297 = shalt.err (!%p1294_p12)
}
  0x47   : > { %1161 = dma.hbm_to_vmem [thread:$0]  (!%p1734_p2), %s437_s26, 128, %s440_s17, %s1744_s10  }
  0x48   : > { %s1309_s8 = scalar_lea.vmem %s376_s21, 256  ;;  %p2019_p10 = pneg %p1690_p11 }
  0x49   : > { %p1310_p6 = scmp.ne.s32.totalorder %s376_s21, %s1309_s8  ;;  %p1317_p3 = scmp.lt.s32.totalorder %s376_s21, %s376_s21 }
  0x4a   : > { %p1318_p4 = scmp.lt.s32.totalorder %s1309_s8, %s1309_s8 }
  0x4b   : > { %p1312_p13 = pnand %p1310_p6, %p2019_p10 }
  0x4c   : > { %p1319_p8 = por %p1318_p4, %p1317_p3 }
  0x4d   : > { %p1313_p9 = pneg %p1312_p13 }
  0x4f   : > { %p1320_p5 = pnand %p1319_p8, %p1313_p9 }
  0x51   : > { %1323 = shalt.err (!%p1320_p5)
}
  0x52   : > { %s2020_s11 = smov 4   ;;  %s2021_s22 = smov 64  }
  0x53   : > { %s2022_s5 = sld [smem:[#allocation31_spill]]  ;;  %s1561_s17 = smov [#allocation11]  }
  0x54   : > { %s391_s28 = sshll.u32 %s1561_s17, 4  ;;  %p2023_p6 = pmov %p2019_p10  ;;  %s392_s28 = int_to_ptr.vmem [resolvable:$true] %s391_s28 }
  0x55   : > { %s1335_s26 = scalar_lea.vmem %s392_s28, 256  ;;  %p1343_p12 = scmp.lt.s32.totalorder %s392_s28, %s392_s28 }
  0x56   : > { %p1336_p1 = scmp.ne.s32.totalorder %s392_s28, %s1335_s26  ;;  %p1344_p3 = scmp.lt.s32.totalorder %s1335_s26, %s1335_s26 }
  0x58   : > { %p1338_p4 = pnand %p1336_p1, %p2023_p6  ;;  %p1345_p9 = por %p1344_p3, %p1343_p12 }
  0x59   : > { %1151 = dma.hbm_to_vmem [thread:$0]  (!%p1690_p11), %s2022_s5, 256, %s376_s21, [#allocation9], %s2021_s22, %s2021_s22, %s2020_s11  }
  0x5a   : > { %p1339_p8 = pneg %p1338_p4 }
  0x5c   : > { %p1346_p0 = pnand %p1345_p9, %p1339_p8 }
  0x5e   : > { %1349 = shalt.err (!%p1346_p0)
}
  0x5f   : > { %1154 = dma.hbm_to_vmem [thread:$0]  (!%p1690_p11), %s1973_s7, 256, %s392_s28, [#allocation12], %s2021_s22, %s2021_s22, %s2020_s11  }
  0x60   : > { %s418_s12 = scalar_lea.hbm %s1966_s0, %s1729_s16  ;;  %s412_s15 = scalar_lea.vmem [#allocation2], %s1726_s29 }
  0x61   : > { %s420_s17 = sshll.u32 %s412_s15, 4  ;;  %s2024_s26 = sand.u32 1, %s1542_s19   ;;  %s421_s17 = int_to_ptr.vmem [resolvable:$true] %s420_s17 }
  0x62   : > { %s409_s30 = scalar_lea.sflag [#allocation3], %s2024_s26  ;;  %s1363_s1 = scalar_lea.vmem %s421_s17, 128 }
  0x63   : > { %p1364_p7 = scmp.ne.s32.totalorder %s421_s17, %s1363_s1  ;;  %p2025_p10 = pneg %p1734_p2 }
  0x64   : > { %s1562_s21 = smov [#allocation2]  }
  0x65   : > { %p1366_p13 = pnand %p1364_p7, %p2025_p10  ;;  %s1368_s13 = sshll.u32 %s1562_s21, 4  ;;  %s1369_s13 = int_to_ptr.vmem [resolvable:$false] %s1368_s13 }
  0x66   : > { %s1370_s5 = scalar_lea.vmem %s1369_s13, 256  ;;  %p1371_p11 = scmp.lt.s32.totalorder %s421_s17, %s1369_s13 }
  0x67   : > { %p1367_p5 = pneg %p1366_p13  ;;  %p1372_p1 = scmp.lt.s32.totalorder %s1370_s5, %s1363_s1 }
  0x69   : > { %p1373_p6 = por %p1372_p1, %p1371_p11 }
  0x6b   : > { %p1374_p4 = pnand %p1373_p6, %p1367_p5 }
  0x6d   : > { %1377 = shalt.err (!%p1374_p4)
}
  0x6e   : > { %1158 = dma.hbm_to_vmem [thread:$0]  (!%p1734_p2), %s418_s12, 128, %s421_s17, %s409_s30  }
  0x6f   : > { %s456_s28 = scalar_lea.hbm %s1968_s2, %s1729_s16  ;;  %s450_s3 = scalar_lea.vmem [#allocation7], %s1726_s29 }
  0x70   : > { %s458_s8 = sshll.u32 %s450_s3, 4  ;;  %p2026_p12 = pmov %p2025_p10  ;;  %s459_s8 = int_to_ptr.vmem [resolvable:$true] %s458_s8 }
  0x71   : > { %s1391_s15 = scalar_lea.vmem %s459_s8, 128  ;;  %s1563_s1 = smov [#allocation7]  }
  0x72   : > { %p1392_p8 = scmp.ne.s32.totalorder %s459_s8, %s1391_s15  ;;  %s1396_s5 = sshll.u32 %s1563_s1, 4  ;;  %s1397_s5 = int_to_ptr.vmem [resolvable:$false] %s1396_s5 }
  0x73   : > { %s1398_s26 = scalar_lea.vmem %s1397_s5, 256  ;;  %p1399_p0 = scmp.lt.s32.totalorder %s459_s8, %s1397_s5 }
  0x74   : > { %p1394_p3 = pnand %p1392_p8, %p2026_p12  ;;  %p1400_p7 = scmp.lt.s32.totalorder %s1398_s26, %s1391_s15 }
  0x76   : > { %p1395_p9 = pneg %p1394_p3  ;;  %p1401_p10 = por %p1400_p7, %p1399_p0 }
  0x78   : > { %p1402_p13 = pnand %p1401_p10, %p1395_p9 }
  0x7a   : > { %1405 = shalt.err (!%p1402_p13)
}
  0x7b   : > { %1164 = dma.hbm_to_vmem [thread:$0]  (!%p1734_p2), %s456_s28, 128, %s459_s8, %s1744_s10  }
  0x7c   : > { %p2027_p5 = scmp.ne.s32.totalorder %s2010_s27, 0 }
  0x7d   : > { %s1802_s29 = sand.u32 (!%p2027_p5), 1, %s1538_s18   ;;  %p2028_p11 = scmp.ne.s32.totalorder (!%p2027_p5), %s2007_s25, 0 }
  0x7e   : > { %467 = sbr.rel (%p2027_p5) target bundleno = 408 (0x198), region = 56  ;;  %s1805_s16 = sshll.u32 (!%p2027_p5), %s1802_s29, 3 }
  0x7f   : > { %s470_s12 = scalar_lea.sflag (!%p2027_p5), [#allocation3], %s1802_s29  ;;  %s473_s17 = scalar_lea.vmem (!%p2027_p5), [#allocation2], %s1805_s16 }
  0x83   : > { %1509 = dma.done.wait (%p2028_p11), %s470_s12, 128  }
  0x84   : > { %1511 = vsyncadd (%p2028_p11), %s470_s12, 4294967168  ;;  %s478_s10 = sand.u32 1, %s1660_s23   ;;  %s482_s14 = scalar_lea.vmem [#allocation5], %s1805_s16 }
  0x85   : > { %s479_s27 = scalar_lea.sflag [#allocation6], %s478_s10 }
  0x86   : > { %1513 = dma.done.wait (%p2028_p11), %s479_s27, 256  }
  0x87   : > { %1515 = vsyncadd (%p2028_p11), %s479_s27, 4294967040  ;;  %s491_s30 = scalar_lea.vmem [#allocation7], %s1805_s16  ;;  %p2029_p2 = scmp.eq.s32.totalorder %s1660_s23, 0 }
  0x89   : > { %1517 = dma.done.wait (%p2029_p2), [#allocation9], 512   ;;  %p2030_p1 = pmov %p2029_p2 }
  0x8b   : > { %1519 = vsyncadd (%p2030_p1), [#allocation9], 4294966784  ;;  %p2031_p6 = pmov %p2030_p1 }
  0x8c   : > { %p2032_p4 = pmov %p2030_p1 }
  0x8d   : > { %1521 = dma.done.wait (%p2031_p6), [#allocation12], 256  }
  0x8e   : > { %1523 = vsyncadd (%p2032_p4), [#allocation12], 4294967040  ;;  %v1564_v0 = vmov 0.0   ;;  %vm1565_vm0 = vmmov 0   ;;  %v1238_v1 = vld [vmem:[#allocation8 + $0x8] sm:$0xff]   ;;  %v1239_v2 = vld [vmem:[#allocation10 + $0x8] sm:$0xff]  }
  0x8f   : > { %1097 = vmatprep.subr.bf16.mxu0 %v1564_v0  ;;  %1105 = vmatprep.subr.bf16.mxu1 %v1564_v0  ;;  %v1240_v3 = vld [vmem:[#allocation8] sm:$0xff]   ;;  %v1241_v4 = vld [vmem:[#allocation10] sm:$0xff]   ;;  %vm588_vm1 = vcmask 261120   ;;  %v1242_v8 = vld [vmem:[#allocation11 + $0x8] sm:$0xff]   ;;  %s1836_s25 = sshll.u32 %s1802_s29, 2  ;;  %s1845_s28 = sshll.u32 %s1546_s20, 6 }
  0x90   : > { %1101 = vmatprep.mubr.msk.bf16.mxu0 %vm1565_vm0, %v1564_v0  ;;  %1109 = vmatprep.mubr.msk.bf16.mxu1 %vm1565_vm0, %v1564_v0  ;;  %v563_v5 = vld [vmem:[%s473_s17] sm:$0xff]  ;;  %v635_v7 = vld [vmem:[%s482_s14] sm:$0xff]  ;;  %s547_s3 = scalar_lea.vmem [#allocation13], %s1836_s25  ;;  %s554_s15 = scalar_lea.vmem [#allocation14], %s1836_s25  ;;  %vm633_vm2 = vcmask 257024  }
  0x91   : > { %1098 = vmatpush3.bf16.msra.mxu0 %v1238_v1  ;;  %1106 = vmatpush3.bf16.msra.mxu1 %v1239_v2  ;;  %v564_v6 = vpack.c.bf16 %v563_v5, %v563_v5  ;;  %v636_v9 = vpack.c.bf16 %v635_v7, %v635_v7  ;;  %v1243_v10 = vld [vmem:[#allocation11] sm:$0xff]   ;;  %v705_v11 = vld [vmem:[%s491_s30] sm:$0xff]  ;;  %s800_s8 = sshll.u32 %s547_s3, 4  ;;  %s814_s1 = sshll.u32 %s554_s15, 4  ;;  %s1855_s8 = int_to_ptr.vmem [resolvable:$true] %s800_s8  ;;  %s1863_s1 = int_to_ptr.vmem [resolvable:$true] %s814_s1 }
  0x92   : > { %1099 = vmatprep.subr.bf16.mxu0 %v1564_v0  ;;  %1107 = vmatprep.subr.bf16.mxu1 %v1564_v0  ;;  %v706_v12 = vpack.c.bf16 %v705_v11, %v705_v11  ;;  %v1068_v13 = vld [vmem:[%s1970_s4] ss:$0 sm:$0xff]  ;;  %s1853_s20 = scalar_lea.hbm %s1975_s9, %s1845_s28  ;;  %s2033_s17 = sld [smem:[#allocation33_spill]] }
  0x93   : > { %v1072_v14 = vld [vmem:[%s1972_s6] ss:$0 sm:$0xff]  ;;  %s2035_s13 = sld [smem:[#allocation32_spill]]  ;;  %s776_s11 = scalar_lea.sflag [#allocation4], %s1802_s29 }
  0x94   : > { %s1406_s22 = scalar_lea.vmem %s1855_s8, 64  ;;  %p2036_p12 = scmp.ne.s32.totalorder %s2015_s24, 0 }
  0x95   : > { %1100 = vmatpush3.bf16.msra.mxu0 %v1240_v3  ;;  %1108 = vmatpush3.bf16.msra.mxu1 %v1241_v4  ;;  %p1407_p8 = scmp.ne.s32.totalorder %s1855_s8, %s1406_s22  ;;  %s1566_s5 = smov [#allocation13]  }
  0x96   : > { %1113 = vmatprep.subr.bf16.mxu0 %v1564_v0  ;;  %s1410_s26 = sshll.u32 %s1566_s5, 4  ;;  %s1411_s26 = int_to_ptr.vmem [resolvable:$false] %s1410_s26 }
  0x97   : > { %p1408_p3 = pnand %p1407_p8, %p2036_p12  ;;  %s1412_s16 = scalar_lea.vmem %s1411_s26, 128 }
  0x98   : > { %1102 = vmatmul.mubr.msk.bf16.vlgmr.msra.gmra.mxu0 %vm588_vm1, %v564_v6  ;;  %1110 = vmatmul.mubr.msk.bf16.vlgmr.msra.gmra.mxu1 %vm588_vm1, %v636_v9  ;;  %s2034_s27 = smov %s2033_s17  ;;  %s1861_s14 = scalar_lea.hbm %s2033_s17, %s1845_s28 }
  0x99   : > { %1114 = vmatpush3.bf16.msra.mxu0 %v1242_v8  ;;  %1117 = vmatprep.mubr.msk.bf16.mxu0 %vm1565_vm0, %v1564_v0  ;;  %v1076_v26 = vld [vmem:[%s2035_s13] ss:$0 sm:$0xff]  ;;  %p1409_p9 = pneg %p1408_p3  ;;  %p1413_p0 = scmp.lt.s32.totalorder %s1855_s8, %s1411_s26 }
  0x9a   : > { %1115 = vmatprep.subr.bf16.mxu0 %v1564_v0  ;;  %p1414_p7 = scmp.lt.s32.totalorder %s1412_s16, %s1406_s22 }
  0x9c   : > { %p1415_p10 = por %p1414_p7, %p1413_p0 }
  0x9d   : > { %1116 = vmatpush3.bf16.msra.mxu0 %v1243_v10 }
  0x9e   : > { %p1416_p13 = pnand %p1415_p10, %p1409_p9 }
  0xa0   : > { %1118 = vmatmul.mubr.msk.bf16.vlgmr.msra.gmra.mxu0 %vm588_vm1, %v706_v12 }
 0x158   : > { %v626_v15 = vpop.f32.mrf.mxu0  ;;  %v697_v17 = vpop.f32.mrf.mxu1 }
 0x159   : > { %v627_v16 = vadd.f32 %v1068_v13, %v626_v15  ;;  %v698_v19 = vadd.f32 %v1072_v14, %v697_v17 }
 0x15a   : > { %v1103_v18 = vpop.f32.mrf.mxu0  ;;  %v1111_v21 = vpop.f32.mrf.mxu1 }
 0x15b   : > { %v632_v20 = vpack.c.bf16 %v627_v16, %v627_v16  ;;  %v703_v22 = vpack.c.bf16 %v698_v19, %v698_v19 }
 0x15c   : > { %v629_v23 = vpop.f32.mrf.mxu0  ;;  %v700_v24 = vpop.f32.mrf.mxu1 }
 0x15d   : > { %634 = vst.msk [vmem:[%s547_s3] sm:$0xf] %vm633_vm2, %v632_v20  ;;  %704 = vst.msk [vmem:[%s554_s15] sm:$0xf] %vm633_vm2, %v703_v22 }
 0x15e   : > { %v1104_v25 = vpop.f32.mrf.mxu0 }
 0x15f   : > { %1419 = shalt.err (!%p1416_p13)
}
 0x160   : > { %s1420_s3 = scalar_lea.hbm %s1853_s20, 64  ;;  %s1424_s12 = scalar_lea.hbm %s1975_s9, 128 }
 0x161   : > { %p1421_p5 = scmp.ne.s32.totalorder %s1853_s20, %s1420_s3  ;;  %p1425_p1 = scmp.lt.s32.totalorder %s1853_s20, %s1975_s9 }
 0x162   : > { %p1426_p6 = scmp.lt.s32.totalorder %s1424_s12, %s1420_s3 }
 0x163   : > { %p1422_p11 = pnand %p1421_p5, %p2036_p12 }
 0x164   : > { %p1427_p4 = por %p1426_p6, %p1425_p1 }
 0x165   : > { %p1423_p2 = pneg %p1422_p11 }
 0x167   : > { %p1428_p8 = pnand %p1427_p4, %p1423_p2 }
 0x169   : > { %1431 = shalt.err (!%p1428_p8)
}
 0x16a   : > { %1139 = dma.vmem_to_hbm [thread:$0]  (%p2036_p12), %s1855_s8, 64, %s1853_s20, %s776_s11   ;;  %v1112_v27 = vpop.f32.mrf.mxu1 }
 0x16b   : > { %s1893_s21 = scalar_lea.sflag [#allocation15], %s478_s10  ;;  %s1432_s13 = scalar_lea.vmem %s1863_s1, 64 }
 0x16c   : > { %p1433_p3 = scmp.ne.s32.totalorder %s1863_s1, %s1432_s13  ;;  %s1567_s22 = smov [#allocation14]  }
 0x16d   : > { %s1436_s5 = sshll.u32 %s1567_s22, 4  ;;  %s1437_s5 = int_to_ptr.vmem [resolvable:$false] %s1436_s5 }
 0x16e   : > { %p1434_p9 = pnand %p1433_p3, %p2036_p12  ;;  %s1438_s26 = scalar_lea.vmem %s1437_s5, 128 }
 0x16f   : > { %p1439_p7 = scmp.lt.s32.totalorder %s1863_s1, %s1437_s5  ;;  %p1440_p10 = scmp.lt.s32.totalorder %s1438_s26, %s1432_s13 }
 0x170   : > { %p1435_p0 = pneg %p1434_p9 }
 0x171   : > { %p1441_p13 = por %p1440_p10, %p1439_p7 }
 0x173   : > { %p1442_p5 = pnand %p1441_p13, %p1435_p0 }
 0x175   : > { %1445 = shalt.err (!%p1442_p5)
}
 0x176   : > { %s1446_s23 = scalar_lea.hbm %s1861_s14, 64  ;;  %s1450_s20 = scalar_lea.hbm %s2034_s27, 128 }
 0x177   : > { %p1447_p11 = scmp.ne.s32.totalorder %s1861_s14, %s1446_s23  ;;  %p1451_p6 = scmp.lt.s32.totalorder %s1861_s14, %s2034_s27 }
 0x178   : > { %p1452_p4 = scmp.lt.s32.totalorder %s1450_s20, %s1446_s23 }
 0x179   : > { %p1448_p2 = pnand %p1447_p11, %p2036_p12 }
 0x17a   : > { %p1453_p8 = por %p1452_p4, %p1451_p6 }
 0x17b   : > { %p1449_p1 = pneg %p1448_p2 }
 0x17d   : > { %p1454_p3 = pnand %p1453_p8, %p1449_p1 }
 0x17f   : > { %1457 = shalt.err (!%p1454_p3)
}
 0x180   : > { %1140 = dma.vmem_to_hbm [thread:$0]  (%p2036_p12), %s1863_s1, 64, %s1861_s14, %s1893_s21   ;;  %v767_v28 = vpop.f32.mrf.mxu0 }
 0x181   : > { %s561_s3 = scalar_lea.vmem [#allocation16], %s1836_s25  ;;  %v768_v29 = vadd.f32 %v1076_v26, %v767_v28  ;;  %s2037_s17 = sld [smem:[#allocation34_spill]] }
 0x182   : > { %s828_s29 = sshll.u32 %s561_s3, 4  ;;  %v1119_v30 = vpop.f32.mrf.mxu0  ;;  %s1568_s25 = smov [#allocation16]   ;;  %s829_s29 = int_to_ptr.vmem [resolvable:$true] %s828_s29 }
 0x183   : > { %v773_v31 = vpack.c.bf16 %v768_v29, %v768_v29  ;;  %s1458_s22 = scalar_lea.vmem %s829_s29, 64  ;;  %s1462_s1 = sshll.u32 %s1568_s25, 4  ;;  %s1463_s1 = int_to_ptr.vmem [resolvable:$false] %s1462_s1 }
 0x184   : > { %v770_v32 = vpop.f32.mrf.mxu0  ;;  %p1459_p9 = scmp.ne.s32.totalorder %s829_s29, %s1458_s22  ;;  %s1464_s14 = scalar_lea.vmem %s1463_s1, 128 }
 0x185   : > { %774 = vst.msk [vmem:[%s561_s3] sm:$0xf] %vm633_vm2, %v773_v31  ;;  %p1465_p10 = scmp.lt.s32.totalorder %s829_s29, %s1463_s1  ;;  %p1466_p13 = scmp.lt.s32.totalorder %s1464_s14, %s1458_s22 }
 0x186   : > { %v1120_v33 = vpop.f32.mrf.mxu0  ;;  %p1460_p0 = pnand %p1459_p9, %p2036_p12 }
 0x187   : > { %s2038_s30 = smov %s2037_s17  ;;  %s1921_s13 = scalar_lea.hbm %s2037_s17, %s1845_s28 }
 0x188   : > { %p1461_p7 = pneg %p1460_p0  ;;  %p1467_p5 = por %p1466_p13, %p1465_p10 }
 0x18a   : > { %p1468_p11 = pnand %p1467_p5, %p1461_p7 }
 0x18c   : > { %1471 = shalt.err (!%p1468_p11)
}
 0x18d   : > { %s1472_s28 = scalar_lea.hbm %s1921_s13, 64  ;;  %s1476_s23 = scalar_lea.hbm %s2038_s30, 128 }
 0x18e   : > { %p1473_p2 = scmp.ne.s32.totalorder %s1921_s13, %s1472_s28  ;;  %p1477_p4 = scmp.lt.s32.totalorder %s1921_s13, %s2038_s30 }
 0x18f   : > { %p1478_p8 = scmp.lt.s32.totalorder %s1476_s23, %s1472_s28 }
 0x190   : > { %p1474_p1 = pnand %p1473_p2, %p2036_p12 }
 0x191   : > { %p1479_p3 = por %p1478_p8, %p1477_p4 }
 0x192   : > { %p1475_p6 = pneg %p1474_p1 }
 0x194   : > { %p1480_p9 = pnand %p1479_p3, %p1475_p6 }
 0x196   : > { %1483 = shalt.err (!%p1480_p9)
}
 0x197   : > { %1141 = dma.vmem_to_hbm [thread:$0]  (%p2036_p12), %s829_s29, 64, %s1921_s13, %s1893_s21  }
 0x198 PF: > { %s2039_s20 = sld [smem:[#allocation23_spill]] }
 0x199   : > { %s2040_s11 = sld [smem:[#allocation26_spill]] }
 0x19a   : > { %s2041_s16 = sld [smem:[#allocation25_spill]] }
 0x19e   : > { %s840_s3 = sand.u32 1, %s2039_s20  }
 0x19f   : > { %p2042_p0 = scmp.ne.s32.totalorder %s2040_s11, 0  ;;  %s841_s15 = scalar_lea.sflag [#allocation4], %s840_s3 }
 0x1a0   : > { %p2043_p7 = scmp.ge.s32.totalorder %s2041_s16, 2 }
 0x1a2   : > { %p1166_p10 = pnand %p2043_p7, %p2042_p0 }
 0x1a4   : > { %p1167_p13 = pneg %p1166_p10 }
 0x1a6   : > { %1525 = dma.done.wait (%p1167_p13), %s841_s15, 64  }
 0x1a7   : > { %1527 = vsyncadd (%p1167_p13), %s841_s15, 4294967232  ;;  %s2044_s12 = sadd.s32 4294967294, %s2041_s16  }
 0x1a8   : > { %s849_s17 = sand.u32 1, %s2044_s12  }
 0x1a9   : > { %s850_s22 = scalar_lea.sflag [#allocation15], %s849_s17 }
 0x1aa   : > { %1529 = dma.done.wait (%p1167_p13), %s850_s22, 128  }
 0x1ab   : > { %1531 = vsyncadd (%p1167_p13), %s850_s22, 4294967168  ;;  %s36_s22 = sadd.s32 1, %s2041_s16   ;;  %s2045_s24 = sld [smem:[#allocation28_spill]] }
 0x1ac   : > { %p33_p12 = scmp.ge.s32.totalorder %s36_s22, 4   ;;  %s2046_s20 = sld [smem:[#allocation24_spill]] }
 0x1ad   : > { %s2047_s21 = sld [smem:[#allocation27_spill]]  ;;  %s2048_s17 = smov %s1538_s18 }
 0x1ae   : > { %s2049_s18 = smov %s1542_s19  ;;  %35 = sbr.rel (!%p33_p12) target bundleno = 19 (0x13), region = 169 }
 0x1b1   : > { %s2050_s19 = smov %s2045_s24 }
 0x1b3   :  { %864 = vsyncpa [#allocation3], 1 }
 0x1b4   :  { %866 = vsyncpa [#allocation3 + $0x1], 1 }
 0x1b5   :  { %867 = vsyncpa [#allocation6], 1 }
 0x1b6   :  { %869 = vsyncpa [#allocation6 + $0x1], 1 }
 0x1b7   :  { %870 = vsyncpa [#allocation9], 1 }
 0x1b8   :  { %871 = vsyncpa [#allocation12], 1 }
 0x1b9   :  { %872 = vsyncpa [#allocation4], 1 }
 0x1ba   :  { %874 = vsyncpa [#allocation4 + $0x1], 1 }
 0x1bb   :  { %875 = vsyncpa [#allocation15], 1 }
 0x1bc   :  { %877 = vsyncpa [#allocation15 + $0x1], 1 }

</bundles_post_ra>
